<compile_context>
chip_gen: v5e
topology: v5e:2x2
jax: 0.10.0
libtpu: 0.0.40
codegen_flags: <defaults>
</compile_context>

<pallas_src>
import functools
import math

import jax
import jax.numpy as jnp
from jax.experimental import pallas as pl
from jax.experimental.pallas import tpu as pltpu


def _round_up(x, m):
    return (x + m - 1) // m * m


def _ctrnn_kernel(proj_ref, w_hh_hbm, out_ref, h_scratch, w_vmem,
                  *, t_blk, alpha, oneminusalpha, mxu_dtype):
    """One grid step = T_BLK recurrent timesteps for one batch tile.

    proj_ref : (T_BLK, B_TILE, Hp) f32   hoisted x@W_in^T + b_in + b_hh
    w_hh_hbm : (Hp, Hp) mxu_dtype        recurrent weight, left in HBM
    out_ref  : (T_BLK, B_TILE, Hp) f32
    h_scratch: (B_TILE, Hp) f32          hidden state, persists across grid steps
    w_vmem   : (Hp, Hp) mxu_dtype        single-buffered VMEM copy of W_hh
    """
    t = pl.program_id(1)

    @pl.when(t == 0)
    def _():
        # One-time (per batch tile) copy of the grid-invariant recurrent weight
        # into single-buffered VMEM, and hidden-state reset (init_hidden = zeros).
        pltpu.sync_copy(w_hh_hbm, w_vmem)
        h_scratch[...] = jnp.zeros_like(h_scratch)

    def step(i, carry):
        h = h_scratch[...]                                     # (B_TILE, Hp) f32
        pre = proj_ref[i] + jnp.dot(h.astype(mxu_dtype), w_vmem[...],
                                    preferred_element_type=jnp.float32)
        if oneminusalpha == 0.0:
            # alpha == 1 (dt=None): skip the interpolation entirely.
            h_new = jnp.maximum(pre, 0.0)
        else:
            h_new = jnp.maximum(h * oneminusalpha + pre * alpha, 0.0)
        h_scratch[...] = h_new
        out_ref[i] = h_new.astype(out_ref.dtype)
        return carry

    jax.lax.fori_loop(0, t_blk, step, 0, unroll=True)


def ctrnn_forward(x, w_in, b_in, w_hh, b_hh, *, alpha=1.0, t_blk=8,
                  b_tile_max=256, mxu_dtype=jnp.bfloat16):
    """CTRNN forward pass (PyTorch parameter layouts).

    x    : (seq_len, batch, input_size) f32
    w_in : (hidden, input),  b_in: (hidden,)    -- nn.Linear(input_size, hidden_size)
    w_hh : (hidden, hidden), b_hh: (hidden,)    -- nn.Linear(hidden_size, hidden_size)

    Returns (output (seq_len, batch, hidden) f32, hidden (batch, hidden) f32),
    matching torch:  pre = input2h(x_t) + h2h(h); h = relu(h*(1-a) + pre*a).
    """
    seq_len, batch, input_size = x.shape
    hidden_size = w_hh.shape[0]
    oneminusalpha = 1.0 - alpha

    # ---- Hoisted input projection: one big GEMM (only h @ W_hh is recurrent). ----
    proj = (jnp.dot(x.reshape(seq_len * batch, input_size).astype(mxu_dtype),
                    w_in.T.astype(mxu_dtype),
                    preferred_element_type=jnp.float32)
            + (b_in + b_hh).astype(jnp.float32)
            ).reshape(seq_len, batch, hidden_size)

    # ---- Pad for TPU lane/sublane density and time blocking. ----
    t_blk = max(1, min(t_blk, seq_len))
    sp = _round_up(seq_len, t_blk)          # time padded to a whole # of blocks
    hp = _round_up(hidden_size, 128)        # lane-dense (unmasked) stores
    bp = _round_up(batch, 8)                # full sublanes
    if bp > b_tile_max:
        b_tile = b_tile_max
        bp = _round_up(bp, b_tile)
    else:
        b_tile = bp

    # Zero padding keeps the recurrence exact: padded rows/lanes stay zero.
    proj_p = jnp.pad(proj, ((0, sp - seq_len), (0, bp - batch),
                            (0, hp - hidden_size)))
    w_hh_p = jnp.pad(w_hh.T.astype(mxu_dtype),
                     ((0, hp - hidden_size), (0, hp - hidden_size)))

    grid = (bp // b_tile, sp // t_blk)

    kernel = functools.partial(
        _ctrnn_kernel, t_blk=t_blk, alpha=float(alpha),
        oneminusalpha=float(oneminusalpha), mxu_dtype=mxu_dtype)

    out_p = pl.pallas_call(
        kernel,
        out_shape=jax.ShapeDtypeStruct((sp, bp, hp), jnp.float32),
        grid_spec=pltpu.PrefetchScalarGridSpec(
            num_scalar_prefetch=0,
            grid=grid,
            in_specs=[
                # T_BLK timesteps of the hoisted projection per grid step.
                pl.BlockSpec((t_blk, b_tile, hp), lambda b, t: (t, b, 0)),
                # Grid-invariant recurrent weight: stays in HBM, DMA'd manually
                # once into a single-buffered VMEM scratch (no double-buffering).
                pl.BlockSpec(memory_space=pl.ANY),
            ],
            out_specs=pl.BlockSpec((t_blk, b_tile, hp), lambda b, t: (t, b, 0)),
            scratch_shapes=[
                pltpu.VMEM((b_tile, hp), jnp.float32),   # hidden state carry
                pltpu.VMEM((hp, hp), mxu_dtype),         # resident W_hh^T
            ],
        ),
        compiler_params=pltpu.CompilerParams(
            # Batch rows are independent -> "parallel" (megacore on v7x);
            # time is a true recurrence  -> "arbitrary".
            dimension_semantics=("parallel", "arbitrary")),
    )(proj_p, w_hh_p)

    out = out_p[:seq_len, :batch, :hidden_size]
    # Final hidden state == last output row; no separate kernel output needed.
    return out, out[seq_len - 1]


def init_ctrnn_params(key, input_size, hidden_size):
    """Parameter init mirroring the PyTorch module.

    input2h: nn.Linear default (Kaiming-uniform-like) init.
    h2h:     W = 0.5 * I (reset_parameters), bias default init.
    """
    k1, k2, k3 = jax.random.split(key, 3)
    bound_in = 1.0 / math.sqrt(input_size)
    w_in = jax.random.uniform(k1, (hidden_size, input_size),
                              minval=-bound_in, maxval=bound_in,
                              dtype=jnp.float32)
    b_in = jax.random.uniform(k2, (hidden_size,),
                              minval=-bound_in, maxval=bound_in,
                              dtype=jnp.float32)
    w_hh = 0.5 * jnp.eye(hidden_size, dtype=jnp.float32)
    bound_hh = 1.0 / math.sqrt(hidden_size)
    b_hh = jax.random.uniform(k3, (hidden_size,),
                              minval=-bound_hh, maxval=bound_hh,
                              dtype=jnp.float32)
    return w_in, b_in, w_hh, b_hh


def ctrnn_reference(x, w_in, b_in, w_hh, b_hh, *, alpha=1.0):
    """Pure-JAX reference replicating the PyTorch forward exactly."""
    oneminusalpha = 1.0 - alpha
    seq_len, batch, _ = x.shape
    hidden_size = w_in.shape[0]
    h = jnp.zeros((batch, hidden_size), jnp.float32)
    outs = []
    for t in range(seq_len):
        pre = x[t] @ w_in.T + b_in + h @ w_hh.T + b_hh
        h = jax.nn.relu(h * oneminusalpha + pre * alpha)
        outs.append(h)
    return jnp.stack(outs, axis=0), h


if __name__ == "__main__":
    key = jax.random.PRNGKey(0)
    seq_len, batch, input_size, hidden_size = 8, 4, 16, 32

    kx, kp = jax.random.split(key)
    x = jax.random.normal(kx, (seq_len, batch, input_size), dtype=jnp.float32)
    w_in, b_in, w_hh, b_hh = init_ctrnn_params(kp, input_size, hidden_size)

    # (1) f32 MXU path, dt=None -> alpha = 1 (module default); strict check.
    out, h_last = ctrnn_forward(x, w_in, b_in, w_hh, b_hh,
                                alpha=1.0, mxu_dtype=jnp.float32)
    out = jax.block_until_ready(out)
    h_last = jax.block_until_ready(h_last)
    ref_out, ref_h = ctrnn_reference(x, w_in, b_in, w_hh, b_hh, alpha=1.0)
    assert out.shape == (seq_len, batch, hidden_size)
    assert h_last.shape == (batch, hidden_size)
    assert jnp.allclose(out, ref_out, atol=1e-4, rtol=1e-4)
    assert jnp.allclose(h_last, ref_h, atol=1e-4, rtol=1e-4)

    # (2) f32 MXU path, alpha = 0.2 (dt=20): exercises the interpolation branch
    #     and a multi-grid-step time sweep (t_blk=4 -> 2 time blocks).
    out2, h2 = ctrnn_forward(x, w_in, b_in, w_hh, b_hh,
                             alpha=0.2, t_blk=4, mxu_dtype=jnp.float32)
    out2 = jax.block_until_ready(out2)
    ref_out2, ref_h2 = ctrnn_reference(x, w_in, b_in, w_hh, b_hh, alpha=0.2)
    assert jnp.allclose(out2, ref_out2, atol=1e-4, rtol=1e-4)
    assert jnp.allclose(h2, ref_h2, atol=1e-4, rtol=1e-4)

    # (3) bf16-fed MXU path (f32 accumulation / f32 state): looser tolerance.
    out3, h3 = ctrnn_forward(x, w_in, b_in, w_hh, b_hh,
                             alpha=1.0, mxu_dtype=jnp.bfloat16)
    out3 = jax.block_until_ready(out3)
    assert jnp.allclose(out3, ref_out, atol=5e-2, rtol=5e-2)
    assert jnp.allclose(h3, ref_h, atol=5e-2, rtol=5e-2)

    print("KERNEL_OK")
</pallas_src>

<mosaic_0001>
module attributes {stable_mosaic.version = 11 : i64} {
  func.func @_ctrnn_kernel(%arg0: i32, %arg1: i32, %arg2: memref<8x8x128xf32, #tpu.memory_space<vmem>>, %arg3: memref<128x128xf32, #tpu.memory_space<any>>, %arg4: memref<8x8x128xf32, #tpu.memory_space<vmem>>, %arg5: memref<8x128xf32, #tpu.memory_space<vmem>>, %arg6: memref<128x128xf32, #tpu.memory_space<vmem>>) attributes {dimension_semantics = [#tpu.dimension_semantics<parallel>, #tpu.dimension_semantics<arbitrary>], iteration_bounds = array<i64: 1, 1>, scalar_prefetch = 0 : i64, scratch_operands = 2 : i64, tpu.core_type = #tpu.core_type<tc>, window_params = [{transform_indices = @transform_0, window_bounds = array<i64: 8, 8, 128>}, {}, {transform_indices = @transform_2, window_bounds = array<i64: 8, 8, 128>}]} {
    %c0_i32 = arith.constant 0 : i32
    %0 = arith.cmpi eq, %arg1, %c0_i32 : i32
    %1 = arith.extui %0 : i1 to i32
    %c0_i32_0 = arith.constant 0 : i32
    %2 = arith.cmpi ne, %1, %c0_i32_0 : i32
    scf.if %2 {
      "tpu.region"() ({
        %117 = tpu.sem_alloc : memref<!tpu.dma_semaphore, #tpu.memory_space<semaphore_mem>>
        tpu.enqueue_dma source(%arg3 : memref<128x128xf32, #tpu.memory_space<any>>) target(%arg6 : memref<128x128xf32, #tpu.memory_space<vmem>>) target_semaphore(%117 : memref<!tpu.dma_semaphore, #tpu.memory_space<semaphore_mem>>)
        tpu.wait_dma2 semaphore(%117 : memref<!tpu.dma_semaphore, #tpu.memory_space<semaphore_mem>>) src(%arg3 : memref<128x128xf32, #tpu.memory_space<any>>) dst(%arg6 : memref<128x128xf32, #tpu.memory_space<vmem>>)
        tpu.yield
      }) : () -> ()
      %cst_96 = arith.constant 0.000000e+00 : f32
      %115 = vector.broadcast %cst_96 : f32 to vector<8x128xf32>
      %c0_97 = arith.constant 0 : index
      %c0_98 = arith.constant 0 : index
      %116 = vector.load %arg5[%c0_97, %c0_98] : memref<8x128xf32, #tpu.memory_space<vmem>>, vector<8x128xf32>
      tpu.vector_store %arg5[%c0_97, %c0_98], %115 {strides = array<i32>} : memref<8x128xf32, #tpu.memory_space<vmem>>, vector<8x128xf32>,
    } else {
    }
    %c0_i32_1 = arith.constant 0 : i32
    %c0 = arith.constant 0 : index
    %c0_2 = arith.constant 0 : index
    %3 = vector.load %arg5[%c0, %c0_2] : memref<8x128xf32, #tpu.memory_space<vmem>>, vector<8x128xf32>
    %4 = arith.index_cast %c0_i32_1 : i32 to index
    %c0_3 = arith.constant 0 : index
    %c0_4 = arith.constant 0 : index
    %5 = vector.load %arg2[%4, %c0_3, %c0_4] : memref<8x8x128xf32, #tpu.memory_space<vmem>>, vector<1x8x128xf32>
    %6 = vector.shape_cast %5 : vector<1x8x128xf32> to vector<8x128xf32>
    %c0_5 = arith.constant 0 : index
    %c0_6 = arith.constant 0 : index
    %7 = vector.load %arg6[%c0_5, %c0_6] : memref<128x128xf32, #tpu.memory_space<vmem>>, vector<128x128xf32>
    %cst = arith.constant dense<0.000000e+00> : vector<8x128xf32>
    %8 = tpu.matmul %3, %7, %cst {dimension_numbers = #tpu.dot_dimension_numbers<[1], [0], [0], [1], [0, 0, 1, 1], [], []>} : vector<8x128xf32>, vector<128x128xf32>, vector<8x128xf32> -> vector<8x128xf32>
    %9 = arith.addf %6, %8 : vector<8x128xf32>
    %cst_7 = arith.constant 0.000000e+00 : f32
    %10 = vector.broadcast %cst_7 : f32 to vector<8x128xf32>
    %11 = arith.maximumf %9, %10 : vector<8x128xf32>
    %c0_8 = arith.constant 0 : index
    %c0_9 = arith.constant 0 : index
    %12 = vector.load %arg5[%c0_8, %c0_9] : memref<8x128xf32, #tpu.memory_space<vmem>>, vector<8x128xf32>
    tpu.vector_store %arg5[%c0_8, %c0_9], %11 {strides = array<i32>} : memref<8x128xf32, #tpu.memory_space<vmem>>, vector<8x128xf32>,
    %13 = arith.index_cast %c0_i32_1 : i32 to index
    %c0_10 = arith.constant 0 : index
    %c0_11 = arith.constant 0 : index
    %14 = vector.load %arg4[%13, %c0_10, %c0_11] : memref<8x8x128xf32, #tpu.memory_space<vmem>>, vector<1x8x128xf32>
    %15 = vector.shape_cast %14 : vector<1x8x128xf32> to vector<8x128xf32>
    %16 = vector.shape_cast %11 : vector<8x128xf32> to vector<1x8x128xf32>
    tpu.vector_store %arg4[%13, %c0_10, %c0_11], %16 {strides = array<i32>} : memref<8x8x128xf32, #tpu.memory_space<vmem>>, vector<1x8x128xf32>,
    %c1_i32 = arith.constant 1 : i32
    %c0_12 = arith.constant 0 : index
    %c0_13 = arith.constant 0 : index
    %17 = vector.load %arg5[%c0_12, %c0_13] : memref<8x128xf32, #tpu.memory_space<vmem>>, vector<8x128xf32>
    %18 = arith.index_cast %c1_i32 : i32 to index
    %c0_14 = arith.constant 0 : index
    %c0_15 = arith.constant 0 : index
    %19 = vector.load %arg2[%18, %c0_14, %c0_15] : memref<8x8x128xf32, #tpu.memory_space<vmem>>, vector<1x8x128xf32>
    %20 = vector.shape_cast %19 : vector<1x8x128xf32> to vector<8x128xf32>
    %c0_16 = arith.constant 0 : index
    %c0_17 = arith.constant 0 : index
    %21 = vector.load %arg6[%c0_16, %c0_17] : memref<128x128xf32, #tpu.memory_space<vmem>>, vector<128x128xf32>
    %cst_18 = arith.constant dense<0.000000e+00> : vector<8x128xf32>
    %22 = tpu.matmul %17, %21, %cst_18 {dimension_numbers = #tpu.dot_dimension_numbers<[1], [0], [0], [1], [0, 0, 1, 1], [], []>} : vector<8x128xf32>, vector<128x128xf32>, vector<8x128xf32> -> vector<8x128xf32>
    %23 = arith.addf %20, %22 : vector<8x128xf32>
    %cst_19 = arith.constant 0.000000e+00 : f32
    %24 = vector.broadcast %cst_19 : f32 to vector<8x128xf32>
    %25 = arith.maximumf %23, %24 : vector<8x128xf32>
    %c0_20 = arith.constant 0 : index
    %c0_21 = arith.constant 0 : index
    %26 = vector.load %arg5[%c0_20, %c0_21] : memref<8x128xf32, #tpu.memory_space<vmem>>, vector<8x128xf32>
    tpu.vector_store %arg5[%c0_20, %c0_21], %25 {strides = array<i32>} : memref<8x128xf32, #tpu.memory_space<vmem>>, vector<8x128xf32>,
    %27 = arith.index_cast %c1_i32 : i32 to index
    %c0_22 = arith.constant 0 : index
    %c0_23 = arith.constant 0 : index
    %28 = vector.load %arg4[%27, %c0_22, %c0_23] : memref<8x8x128xf32, #tpu.memory_space<vmem>>, vector<1x8x128xf32>
    %29 = vector.shape_cast %28 : vector<1x8x128xf32> to vector<8x128xf32>
    %30 = vector.shape_cast %25 : vector<8x128xf32> to vector<1x8x128xf32>
    tpu.vector_store %arg4[%27, %c0_22, %c0_23], %30 {strides = array<i32>} : memref<8x8x128xf32, #tpu.memory_space<vmem>>, vector<1x8x128xf32>,
    %c2_i32 = arith.constant 2 : i32
    %c0_24 = arith.constant 0 : index
    %c0_25 = arith.constant 0 : index
    %31 = vector.load %arg5[%c0_24, %c0_25] : memref<8x128xf32, #tpu.memory_space<vmem>>, vector<8x128xf32>
    %32 = arith.index_cast %c2_i32 : i32 to index
    %c0_26 = arith.constant 0 : index
    %c0_27 = arith.constant 0 : index
    %33 = vector.load %arg2[%32, %c0_26, %c0_27] : memref<8x8x128xf32, #tpu.memory_space<vmem>>, vector<1x8x128xf32>
    %34 = vector.shape_cast %33 : vector<1x8x128xf32> to vector<8x128xf32>
    %c0_28 = arith.constant 0 : index
    %c0_29 = arith.constant 0 : index
    %35 = vector.load %arg6[%c0_28, %c0_29] : memref<128x128xf32, #tpu.memory_space<vmem>>, vector<128x128xf32>
    %cst_30 = arith.constant dense<0.000000e+00> : vector<8x128xf32>
    %36 = tpu.matmul %31, %35, %cst_30 {dimension_numbers = #tpu.dot_dimension_numbers<[1], [0], [0], [1], [0, 0, 1, 1], [], []>} : vector<8x128xf32>, vector<128x128xf32>, vector<8x128xf32> -> vector<8x128xf32>
    %37 = arith.addf %34, %36 : vector<8x128xf32>
    %cst_31 = arith.constant 0.000000e+00 : f32
    %38 = vector.broadcast %cst_31 : f32 to vector<8x128xf32>
    %39 = arith.maximumf %37, %38 : vector<8x128xf32>
    %c0_32 = arith.constant 0 : index
    %c0_33 = arith.constant 0 : index
    %40 = vector.load %arg5[%c0_32, %c0_33] : memref<8x128xf32, #tpu.memory_space<vmem>>, vector<8x128xf32>
    tpu.vector_store %arg5[%c0_32, %c0_33], %39 {strides = array<i32>} : memref<8x128xf32, #tpu.memory_space<vmem>>, vector<8x128xf32>,
    %41 = arith.index_cast %c2_i32 : i32 to index
    %c0_34 = arith.constant 0 : index
    %c0_35 = arith.constant 0 : index
    %42 = vector.load %arg4[%41, %c0_34, %c0_35] : memref<8x8x128xf32, #tpu.memory_space<vmem>>, vector<1x8x128xf32>
    %43 = vector.shape_cast %42 : vector<1x8x128xf32> to vector<8x128xf32>
    %44 = vector.shape_cast %39 : vector<8x128xf32> to vector<1x8x128xf32>
    tpu.vector_store %arg4[%41, %c0_34, %c0_35], %44 {strides = array<i32>} : memref<8x8x128xf32, #tpu.memory_space<vmem>>, vector<1x8x128xf32>,
    %c3_i32 = arith.constant 3 : i32
    %c0_36 = arith.constant 0 : index
    %c0_37 = arith.constant 0 : index
    %45 = vector.load %arg5[%c0_36, %c0_37] : memref<8x128xf32, #tpu.memory_space<vmem>>, vector<8x128xf32>
    %46 = arith.index_cast %c3_i32 : i32 to index
    %c0_38 = arith.constant 0 : index
    %c0_39 = arith.constant 0 : index
    %47 = vector.load %arg2[%46, %c0_38, %c0_39] : memref<8x8x128xf32, #tpu.memory_space<vmem>>, vector<1x8x128xf32>
    %48 = vector.shape_cast %47 : vector<1x8x128xf32> to vector<8x128xf32>
    %c0_40 = arith.constant 0 : index
    %c0_41 = arith.constant 0 : index
    %49 = vector.load %arg6[%c0_40, %c0_41] : memref<128x128xf32, #tpu.memory_space<vmem>>, vector<128x128xf32>
    %cst_42 = arith.constant dense<0.000000e+00> : vector<8x128xf32>
    %50 = tpu.matmul %45, %49, %cst_42 {dimension_numbers = #tpu.dot_dimension_numbers<[1], [0], [0], [1], [0, 0, 1, 1], [], []>} : vector<8x128xf32>, vector<128x128xf32>, vector<8x128xf32> -> vector<8x128xf32>
    %51 = arith.addf %48, %50 : vector<8x128xf32>
    %cst_43 = arith.constant 0.000000e+00 : f32
    %52 = vector.broadcast %cst_43 : f32 to vector<8x128xf32>
    %53 = arith.maximumf %51, %52 : vector<8x128xf32>
    %c0_44 = arith.constant 0 : index
    %c0_45 = arith.constant 0 : index
    %54 = vector.load %arg5[%c0_44, %c0_45] : memref<8x128xf32, #tpu.memory_space<vmem>>, vector<8x128xf32>
    tpu.vector_store %arg5[%c0_44, %c0_45], %53 {strides = array<i32>} : memref<8x128xf32, #tpu.memory_space<vmem>>, vector<8x128xf32>,
    %55 = arith.index_cast %c3_i32 : i32 to index
    %c0_46 = arith.constant 0 : index
    %c0_47 = arith.constant 0 : index
    %56 = vector.load %arg4[%55, %c0_46, %c0_47] : memref<8x8x128xf32, #tpu.memory_space<vmem>>, vector<1x8x128xf32>
    %57 = vector.shape_cast %56 : vector<1x8x128xf32> to vector<8x128xf32>
    %58 = vector.shape_cast %53 : vector<8x128xf32> to vector<1x8x128xf32>
    tpu.vector_store %arg4[%55, %c0_46, %c0_47], %58 {strides = array<i32>} : memref<8x8x128xf32, #tpu.memory_space<vmem>>, vector<1x8x128xf32>,
    %c4_i32 = arith.constant 4 : i32
    %c0_48 = arith.constant 0 : index
    %c0_49 = arith.constant 0 : index
    %59 = vector.load %arg5[%c0_48, %c0_49] : memref<8x128xf32, #tpu.memory_space<vmem>>, vector<8x128xf32>
    %60 = arith.index_cast %c4_i32 : i32 to index
    %c0_50 = arith.constant 0 : index
    %c0_51 = arith.constant 0 : index
    %61 = vector.load %arg2[%60, %c0_50, %c0_51] : memref<8x8x128xf32, #tpu.memory_space<vmem>>, vector<1x8x128xf32>
    %62 = vector.shape_cast %61 : vector<1x8x128xf32> to vector<8x128xf32>
    %c0_52 = arith.constant 0 : index
    %c0_53 = arith.constant 0 : index
    %63 = vector.load %arg6[%c0_52, %c0_53] : memref<128x128xf32, #tpu.memory_space<vmem>>, vector<128x128xf32>
    %cst_54 = arith.constant dense<0.000000e+00> : vector<8x128xf32>
    %64 = tpu.matmul %59, %63, %cst_54 {dimension_numbers = #tpu.dot_dimension_numbers<[1], [0], [0], [1], [0, 0, 1, 1], [], []>} : vector<8x128xf32>, vector<128x128xf32>, vector<8x128xf32> -> vector<8x128xf32>
    %65 = arith.addf %62, %64 : vector<8x128xf32>
    %cst_55 = arith.constant 0.000000e+00 : f32
    %66 = vector.broadcast %cst_55 : f32 to vector<8x128xf32>
    %67 = arith.maximumf %65, %66 : vector<8x128xf32>
    %c0_56 = arith.constant 0 : index
    %c0_57 = arith.constant 0 : index
    %68 = vector.load %arg5[%c0_56, %c0_57] : memref<8x128xf32, #tpu.memory_space<vmem>>, vector<8x128xf32>
    tpu.vector_store %arg5[%c0_56, %c0_57], %67 {strides = array<i32>} : memref<8x128xf32, #tpu.memory_space<vmem>>, vector<8x128xf32>,
    %69 = arith.index_cast %c4_i32 : i32 to index
    %c0_58 = arith.constant 0 : index
    %c0_59 = arith.constant 0 : index
    %70 = vector.load %arg4[%69, %c0_58, %c0_59] : memref<8x8x128xf32, #tpu.memory_space<vmem>>, vector<1x8x128xf32>
    %71 = vector.shape_cast %70 : vector<1x8x128xf32> to vector<8x128xf32>
    %72 = vector.shape_cast %67 : vector<8x128xf32> to vector<1x8x128xf32>
    tpu.vector_store %arg4[%69, %c0_58, %c0_59], %72 {strides = array<i32>} : memref<8x8x128xf32, #tpu.memory_space<vmem>>, vector<1x8x128xf32>,
    %c5_i32 = arith.constant 5 : i32
    %c0_60 = arith.constant 0 : index
    %c0_61 = arith.constant 0 : index
    %73 = vector.load %arg5[%c0_60, %c0_61] : memref<8x128xf32, #tpu.memory_space<vmem>>, vector<8x128xf32>
    %74 = arith.index_cast %c5_i32 : i32 to index
    %c0_62 = arith.constant 0 : index
    %c0_63 = arith.constant 0 : index
    %75 = vector.load %arg2[%74, %c0_62, %c0_63] : memref<8x8x128xf32, #tpu.memory_space<vmem>>, vector<1x8x128xf32>
    %76 = vector.shape_cast %75 : vector<1x8x128xf32> to vector<8x128xf32>
    %c0_64 = arith.constant 0 : index
    %c0_65 = arith.constant 0 : index
    %77 = vector.load %arg6[%c0_64, %c0_65] : memref<128x128xf32, #tpu.memory_space<vmem>>, vector<128x128xf32>
    %cst_66 = arith.constant dense<0.000000e+00> : vector<8x128xf32>
    %78 = tpu.matmul %73, %77, %cst_66 {dimension_numbers = #tpu.dot_dimension_numbers<[1], [0], [0], [1], [0, 0, 1, 1], [], []>} : vector<8x128xf32>, vector<128x128xf32>, vector<8x128xf32> -> vector<8x128xf32>
    %79 = arith.addf %76, %78 : vector<8x128xf32>
    %cst_67 = arith.constant 0.000000e+00 : f32
    %80 = vector.broadcast %cst_67 : f32 to vector<8x128xf32>
    %81 = arith.maximumf %79, %80 : vector<8x128xf32>
    %c0_68 = arith.constant 0 : index
    %c0_69 = arith.constant 0 : index
    %82 = vector.load %arg5[%c0_68, %c0_69] : memref<8x128xf32, #tpu.memory_space<vmem>>, vector<8x128xf32>
    tpu.vector_store %arg5[%c0_68, %c0_69], %81 {strides = array<i32>} : memref<8x128xf32, #tpu.memory_space<vmem>>, vector<8x128xf32>,
    %83 = arith.index_cast %c5_i32 : i32 to index
    %c0_70 = arith.constant 0 : index
    %c0_71 = arith.constant 0 : index
    %84 = vector.load %arg4[%83, %c0_70, %c0_71] : memref<8x8x128xf32, #tpu.memory_space<vmem>>, vector<1x8x128xf32>
    %85 = vector.shape_cast %84 : vector<1x8x128xf32> to vector<8x128xf32>
    %86 = vector.shape_cast %81 : vector<8x128xf32> to vector<1x8x128xf32>
    tpu.vector_store %arg4[%83, %c0_70, %c0_71], %86 {strides = array<i32>} : memref<8x8x128xf32, #tpu.memory_space<vmem>>, vector<1x8x128xf32>,
    %c6_i32 = arith.constant 6 : i32
    %c0_72 = arith.constant 0 : index
    %c0_73 = arith.constant 0 : index
    %87 = vector.load %arg5[%c0_72, %c0_73] : memref<8x128xf32, #tpu.memory_space<vmem>>, vector<8x128xf32>
    %88 = arith.index_cast %c6_i32 : i32 to index
    %c0_74 = arith.constant 0 : index
    %c0_75 = arith.constant 0 : index
    %89 = vector.load %arg2[%88, %c0_74, %c0_75] : memref<8x8x128xf32, #tpu.memory_space<vmem>>, vector<1x8x128xf32>
    %90 = vector.shape_cast %89 : vector<1x8x128xf32> to vector<8x128xf32>
    %c0_76 = arith.constant 0 : index
    %c0_77 = arith.constant 0 : index
    %91 = vector.load %arg6[%c0_76, %c0_77] : memref<128x128xf32, #tpu.memory_space<vmem>>, vector<128x128xf32>
    %cst_78 = arith.constant dense<0.000000e+00> : vector<8x128xf32>
    %92 = tpu.matmul %87, %91, %cst_78 {dimension_numbers = #tpu.dot_dimension_numbers<[1], [0], [0], [1], [0, 0, 1, 1], [], []>} : vector<8x128xf32>, vector<128x128xf32>, vector<8x128xf32> -> vector<8x128xf32>
    %93 = arith.addf %90, %92 : vector<8x128xf32>
    %cst_79 = arith.constant 0.000000e+00 : f32
    %94 = vector.broadcast %cst_79 : f32 to vector<8x128xf32>
    %95 = arith.maximumf %93, %94 : vector<8x128xf32>
    %c0_80 = arith.constant 0 : index
    %c0_81 = arith.constant 0 : index
    %96 = vector.load %arg5[%c0_80, %c0_81] : memref<8x128xf32, #tpu.memory_space<vmem>>, vector<8x128xf32>
    tpu.vector_store %arg5[%c0_80, %c0_81], %95 {strides = array<i32>} : memref<8x128xf32, #tpu.memory_space<vmem>>, vector<8x128xf32>,
    %97 = arith.index_cast %c6_i32 : i32 to index
    %c0_82 = arith.constant 0 : index
    %c0_83 = arith.constant 0 : index
    %98 = vector.load %arg4[%97, %c0_82, %c0_83] : memref<8x8x128xf32, #tpu.memory_space<vmem>>, vector<1x8x128xf32>
    %99 = vector.shape_cast %98 : vector<1x8x128xf32> to vector<8x128xf32>
    %100 = vector.shape_cast %95 : vector<8x128xf32> to vector<1x8x128xf32>
    tpu.vector_store %arg4[%97, %c0_82, %c0_83], %100 {strides = array<i32>} : memref<8x8x128xf32, #tpu.memory_space<vmem>>, vector<1x8x128xf32>,
    %c7_i32 = arith.constant 7 : i32
    %c0_84 = arith.constant 0 : index
    %c0_85 = arith.constant 0 : index
    %101 = vector.load %arg5[%c0_84, %c0_85] : memref<8x128xf32, #tpu.memory_space<vmem>>, vector<8x128xf32>
    %102 = arith.index_cast %c7_i32 : i32 to index
    %c0_86 = arith.constant 0 : index
    %c0_87 = arith.constant 0 : index
    %103 = vector.load %arg2[%102, %c0_86, %c0_87] : memref<8x8x128xf32, #tpu.memory_space<vmem>>, vector<1x8x128xf32>
    %104 = vector.shape_cast %103 : vector<1x8x128xf32> to vector<8x128xf32>
    %c0_88 = arith.constant 0 : index
    %c0_89 = arith.constant 0 : index
    %105 = vector.load %arg6[%c0_88, %c0_89] : memref<128x128xf32, #tpu.memory_space<vmem>>, vector<128x128xf32>
    %cst_90 = arith.constant dense<0.000000e+00> : vector<8x128xf32>
    %106 = tpu.matmul %101, %105, %cst_90 {dimension_numbers = #tpu.dot_dimension_numbers<[1], [0], [0], [1], [0, 0, 1, 1], [], []>} : vector<8x128xf32>, vector<128x128xf32>, vector<8x128xf32> -> vector<8x128xf32>
    %107 = arith.addf %104, %106 : vector<8x128xf32>
    %cst_91 = arith.constant 0.000000e+00 : f32
    %108 = vector.broadcast %cst_91 : f32 to vector<8x128xf32>
    %109 = arith.maximumf %107, %108 : vector<8x128xf32>
    %c0_92 = arith.constant 0 : index
    %c0_93 = arith.constant 0 : index
    %110 = vector.load %arg5[%c0_92, %c0_93] : memref<8x128xf32, #tpu.memory_space<vmem>>, vector<8x128xf32>
    tpu.vector_store %arg5[%c0_92, %c0_93], %109 {strides = array<i32>} : memref<8x128xf32, #tpu.memory_space<vmem>>, vector<8x128xf32>,
    %111 = arith.index_cast %c7_i32 : i32 to index
    %c0_94 = arith.constant 0 : index
    %c0_95 = arith.constant 0 : index
    %112 = vector.load %arg4[%111, %c0_94, %c0_95] : memref<8x8x128xf32, #tpu.memory_space<vmem>>, vector<1x8x128xf32>
    %113 = vector.shape_cast %112 : vector<1x8x128xf32> to vector<8x128xf32>
    %114 = vector.shape_cast %109 : vector<8x128xf32> to vector<1x8x128xf32>
    tpu.vector_store %arg4[%111, %c0_94, %c0_95], %114 {strides = array<i32>} : memref<8x8x128xf32, #tpu.memory_space<vmem>>, vector<1x8x128xf32>,
    %c8_i32 = arith.constant 8 : i32
    return
  }
  func.func @transform_0(%arg0: i32, %arg1: i32) -> (i32, i32, i32) {
    %c0_i32 = arith.constant 0 : i32
    %c0_i32_0 = arith.constant 0 : i32
    return %arg1, %arg0, %c0_i32 : i32, i32, i32
  }
  func.func @transform_2(%arg0: i32, %arg1: i32) -> (i32, i32, i32) {
    %c0_i32 = arith.constant 0 : i32
    %c0_i32_0 = arith.constant 0 : i32
    return %arg1, %arg0, %c0_i32 : i32, i32, i32
  }
}

</mosaic_0001>

<bundles_post_ra>
// kernel: tpu_custom_call.1
= control target key start
LH: loop header
LB: loop body
LE: loop exit
PB: predicated region body
PF: predicated region fallthrough
CT: control target
= control target key end

     0   :  { %7 = vsyncpa [#allocation5], 0  ;;  %s696_s0 = inlined_call_operand.hbm [shape: f32[8,8,128], index: 0, kind: input, shape index: {}]   ;;  %s697_s1 = inlined_call_operand.hbm [shape: f32[128,128], index: 1, kind: input, shape index: {}]   ;;  %s698_s2 = inlined_call_operand.hbm [shape: f32[8,8,128], index: 2, kind: output, shape index: {}]  }
   0x1   :  { %8 = vsyncpa [#allocation6], 0  ;;  %s13_s11 = sshll.u32 %s696_s0, 4  ;;  %s500_s12 = smov [#allocation4]   ;;  %s14_s11 = int_to_ptr.hbm [resolvable:$true] %s13_s11 }
   0x2   :  { %s15_s13 = sshll.u32 %s500_s12, 4  ;;  %s501_s14 = smov 128   ;;  %s16_s13 = int_to_ptr.vmem [resolvable:$true] %s15_s13 }
   0x3   :  { %s502_s15 = smov 8  }
   0x4   :  { %21 = dma.hbm_to_vmem [thread:$0]  %s14_s11, 1024, %s16_s13, [#allocation5], %s501_s14, %s501_s14, %s502_s15  }
   0x5   :  { %494 = dma.done.wait [#allocation5], 1024  }
   0x6   :  { %495 = vsyncadd [#allocation5], 4294966272 }
   0x7   :  { %s37_s18 = sshll.u32 %s697_s1, 4  ;;  %s503_s19 = smov [#allocation3]   ;;  %s38_s18 = int_to_ptr.hbm [resolvable:$true] %s37_s18 }
   0x8   :  { %s39_s20 = sshll.u32 %s503_s19, 4  ;;  %s40_s20 = int_to_ptr.vmem [resolvable:$true] %s39_s20 }
   0x9   :  { %42 = dma.hbm_to_vmem [thread:$0]  %s38_s18, 2048, %s40_s20, [#allocation8] }
   0xa   :  { %496 = dma.done.wait [#allocation8], 2048 }
   0xb   :  { %497 = vsyncadd [#allocation8], 4294965248  ;;  %v530_v0 = vld [vmem:[#allocation3 + $0x78] sm:$0xff]  ;;  %v532_v1 = vld [vmem:[#allocation3 + $0x70] sm:$0xff]  ;;  %v504_v16 = vmov 0.0   ;;  %s505_s0 = smov [#allocation7]  }
   0xc   :  { %65 = vmatpush.msra.mxu0 %v530_v0  ;;  %108 = vmatpush.msra.mxu1 %v530_v0  ;;  %v536_v2 = vld [vmem:[#allocation3 + $0x68] sm:$0xff]  ;;  %v542_v3 = vld [vmem:[#allocation3 + $0x60] sm:$0xff]  ;;  %v548_v4 = vld [vmem:[#allocation3 + $0x58] sm:$0xff]  ;;  %s401_s1 = sshll.u32 %s505_s0, 4  ;;  %s403_s23 = sshll.u32 %s698_s2, 4  ;;  %s402_s1 = int_to_ptr.vmem [resolvable:$true] %s401_s1  ;;  %s404_s23 = int_to_ptr.hbm [resolvable:$true] %s403_s23 }
   0xd   :  { %152 = vmatpush.msra.mxu2 %v530_v0  ;;  %196 = vmatpush.msra.mxu3 %v530_v0  ;;  %v554_v5 = vld [vmem:[#allocation3 + $0x50] sm:$0xff]  ;;  %v560_v6 = vld [vmem:[#allocation3 + $0x48] sm:$0xff]  ;;  %v566_v7 = vld [vmem:[#allocation3 + $0x40] sm:$0xff] }
   0xe   :  { %66 = vmatpush.msra.mxu0 %v532_v1  ;;  %109 = vmatpush.msra.mxu1 %v532_v1  ;;  %v572_v8 = vld [vmem:[#allocation3 + $0x38] sm:$0xff]  ;;  %v578_v9 = vld [vmem:[#allocation3 + $0x30] sm:$0xff]  ;;  %v584_v10 = vld [vmem:[#allocation3 + $0x28] sm:$0xff] }
   0xf   :  { %153 = vmatpush.msra.mxu2 %v532_v1  ;;  %197 = vmatpush.msra.mxu3 %v532_v1  ;;  %v590_v11 = vld [vmem:[#allocation3 + $0x20] sm:$0xff]  ;;  %v596_v12 = vld [vmem:[#allocation3 + $0x18] sm:$0xff]  ;;  %v602_v13 = vld [vmem:[#allocation3 + $0x10] sm:$0xff] }
  0x10   :  { %67 = vmatpush.msra.mxu0 %v536_v2  ;;  %110 = vmatpush.msra.mxu1 %v536_v2  ;;  %v608_v14 = vld [vmem:[#allocation3 + $0x8] sm:$0xff]  ;;  %v614_v15 = vld [vmem:[#allocation3] sm:$0xff]  ;;  %v135_v25 = vld [vmem:[#allocation4 + $0x10] sm:$0xff] }
  0x11   :  { %154 = vmatpush.msra.mxu2 %v536_v2  ;;  %198 = vmatpush.msra.mxu3 %v536_v2  ;;  %v48_v17 = vld [vmem:[#allocation4] sm:$0xff]  ;;  %v91_v21 = vld [vmem:[#allocation4 + $0x8] sm:$0xff]  ;;  %v179_v29 = vld [vmem:[#allocation4 + $0x18] sm:$0xff] }
  0x12   :  { %68 = vmatpush.msra.mxu0 %v542_v3  ;;  %111 = vmatpush.msra.mxu1 %v542_v3  ;;  %v223_v33 = vld [vmem:[#allocation4 + $0x20] sm:$0xff]  ;;  %v267_v37 = vld [vmem:[#allocation4 + $0x28] sm:$0xff]  ;;  %v311_v41 = vld [vmem:[#allocation4 + $0x30] sm:$0xff] }
  0x13   :  { %155 = vmatpush.msra.mxu2 %v542_v3  ;;  %199 = vmatpush.msra.mxu3 %v542_v3  ;;  %v355_v45 = vld [vmem:[#allocation4 + $0x38] sm:$0xff] }
  0x14   :  { %69 = vmatpush.msra.mxu0 %v548_v4  ;;  %112 = vmatpush.msra.mxu1 %v548_v4 }
  0x15   :  { %156 = vmatpush.msra.mxu2 %v548_v4  ;;  %200 = vmatpush.msra.mxu3 %v548_v4 }
  0x16   :  { %70 = vmatpush.msra.mxu0 %v554_v5  ;;  %113 = vmatpush.msra.mxu1 %v554_v5 }
  0x17   :  { %157 = vmatpush.msra.mxu2 %v554_v5  ;;  %201 = vmatpush.msra.mxu3 %v554_v5 }
  0x18   :  { %71 = vmatpush.msra.mxu0 %v560_v6  ;;  %114 = vmatpush.msra.mxu1 %v560_v6 }
  0x19   :  { %158 = vmatpush.msra.mxu2 %v560_v6  ;;  %202 = vmatpush.msra.mxu3 %v560_v6 }
  0x1a   :  { %72 = vmatpush.msra.mxu0 %v566_v7  ;;  %115 = vmatpush.msra.mxu1 %v566_v7 }
  0x1b   :  { %159 = vmatpush.msra.mxu2 %v566_v7  ;;  %203 = vmatpush.msra.mxu3 %v566_v7 }
  0x1c   :  { %73 = vmatpush.msra.mxu0 %v572_v8  ;;  %116 = vmatpush.msra.mxu1 %v572_v8 }
  0x1d   :  { %160 = vmatpush.msra.mxu2 %v572_v8  ;;  %204 = vmatpush.msra.mxu3 %v572_v8 }
  0x1e   :  { %74 = vmatpush.msra.mxu0 %v578_v9  ;;  %117 = vmatpush.msra.mxu1 %v578_v9 }
  0x1f   :  { %161 = vmatpush.msra.mxu2 %v578_v9  ;;  %205 = vmatpush.msra.mxu3 %v578_v9 }
  0x20   :  { %75 = vmatpush.msra.mxu0 %v584_v10  ;;  %118 = vmatpush.msra.mxu1 %v584_v10 }
  0x21   :  { %162 = vmatpush.msra.mxu2 %v584_v10  ;;  %206 = vmatpush.msra.mxu3 %v584_v10 }
  0x22   :  { %76 = vmatpush.msra.mxu0 %v590_v11  ;;  %119 = vmatpush.msra.mxu1 %v590_v11 }
  0x23   :  { %163 = vmatpush.msra.mxu2 %v590_v11  ;;  %207 = vmatpush.msra.mxu3 %v590_v11 }
  0x24   :  { %77 = vmatpush.msra.mxu0 %v596_v12  ;;  %120 = vmatpush.msra.mxu1 %v596_v12 }
  0x25   :  { %164 = vmatpush.msra.mxu2 %v596_v12  ;;  %208 = vmatpush.msra.mxu3 %v596_v12 }
  0x26   :  { %78 = vmatpush.msra.mxu0 %v602_v13  ;;  %121 = vmatpush.msra.mxu1 %v602_v13 }
  0x27   :  { %165 = vmatpush.msra.mxu2 %v602_v13  ;;  %209 = vmatpush.msra.mxu3 %v602_v13 }
  0x28   :  { %79 = vmatpush.msra.mxu0 %v608_v14  ;;  %122 = vmatpush.msra.mxu1 %v608_v14 }
  0x29   :  { %166 = vmatpush.msra.mxu2 %v608_v14  ;;  %210 = vmatpush.msra.mxu3 %v608_v14 }
  0x2a   :  { %80 = vmatpush.msra.mxu0 %v614_v15  ;;  %123 = vmatpush.msra.mxu1 %v614_v15 }
  0x2b   :  { %81 = vmatmul.f32.vlgmr.msra.gmra.mxu0 %v504_v16  ;;  %167 = vmatpush.msra.mxu2 %v614_v15 }
  0x2c   :  { %211 = vmatpush.msra.mxu3 %v614_v15  ;;  %240 = vmatpush.msrb.mxu0 %v530_v0 }
  0x2d   :  { %284 = vmatpush.msrb.mxu1 %v530_v0  ;;  %328 = vmatpush.msrb.mxu2 %v530_v0 }
  0x2e   :  { %241 = vmatpush.msrb.mxu0 %v532_v1  ;;  %372 = vmatpush.msrb.mxu3 %v530_v0 }
  0x2f   :  { %285 = vmatpush.msrb.mxu1 %v532_v1  ;;  %329 = vmatpush.msrb.mxu2 %v532_v1 }
  0x30   :  { %242 = vmatpush.msrb.mxu0 %v536_v2  ;;  %373 = vmatpush.msrb.mxu3 %v532_v1 }
  0x31   :  { %286 = vmatpush.msrb.mxu1 %v536_v2  ;;  %330 = vmatpush.msrb.mxu2 %v536_v2 }
  0x32   :  { %243 = vmatpush.msrb.mxu0 %v542_v3  ;;  %374 = vmatpush.msrb.mxu3 %v536_v2 }
  0x33   :  { %287 = vmatpush.msrb.mxu1 %v542_v3  ;;  %331 = vmatpush.msrb.mxu2 %v542_v3 }
  0x34   :  { %244 = vmatpush.msrb.mxu0 %v548_v4  ;;  %375 = vmatpush.msrb.mxu3 %v542_v3 }
  0x35   :  { %288 = vmatpush.msrb.mxu1 %v548_v4  ;;  %332 = vmatpush.msrb.mxu2 %v548_v4 }
  0x36   :  { %245 = vmatpush.msrb.mxu0 %v554_v5  ;;  %376 = vmatpush.msrb.mxu3 %v548_v4 }
  0x37   :  { %289 = vmatpush.msrb.mxu1 %v554_v5  ;;  %333 = vmatpush.msrb.mxu2 %v554_v5 }
  0x38   :  { %246 = vmatpush.msrb.mxu0 %v560_v6  ;;  %377 = vmatpush.msrb.mxu3 %v554_v5 }
  0x39   :  { %290 = vmatpush.msrb.mxu1 %v560_v6  ;;  %334 = vmatpush.msrb.mxu2 %v560_v6 }
  0x3a   :  { %247 = vmatpush.msrb.mxu0 %v566_v7  ;;  %378 = vmatpush.msrb.mxu3 %v560_v6 }
  0x3b   :  { %291 = vmatpush.msrb.mxu1 %v566_v7  ;;  %335 = vmatpush.msrb.mxu2 %v566_v7 }
  0x3c   :  { %248 = vmatpush.msrb.mxu0 %v572_v8  ;;  %379 = vmatpush.msrb.mxu3 %v566_v7 }
  0x3d   :  { %292 = vmatpush.msrb.mxu1 %v572_v8  ;;  %336 = vmatpush.msrb.mxu2 %v572_v8 }
  0x3e   :  { %249 = vmatpush.msrb.mxu0 %v578_v9  ;;  %380 = vmatpush.msrb.mxu3 %v572_v8 }
  0x3f   :  { %293 = vmatpush.msrb.mxu1 %v578_v9  ;;  %337 = vmatpush.msrb.mxu2 %v578_v9 }
  0x40   :  { %250 = vmatpush.msrb.mxu0 %v584_v10  ;;  %381 = vmatpush.msrb.mxu3 %v578_v9 }
  0x41   :  { %294 = vmatpush.msrb.mxu1 %v584_v10  ;;  %338 = vmatpush.msrb.mxu2 %v584_v10 }
  0x42   :  { %251 = vmatpush.msrb.mxu0 %v590_v11  ;;  %382 = vmatpush.msrb.mxu3 %v584_v10 }
  0x43   :  { %295 = vmatpush.msrb.mxu1 %v590_v11  ;;  %339 = vmatpush.msrb.mxu2 %v590_v11 }
  0x44   :  { %252 = vmatpush.msrb.mxu0 %v596_v12  ;;  %383 = vmatpush.msrb.mxu3 %v590_v11 }
  0x45   :  { %296 = vmatpush.msrb.mxu1 %v596_v12  ;;  %340 = vmatpush.msrb.mxu2 %v596_v12 }
  0x46   :  { %253 = vmatpush.msrb.mxu0 %v602_v13  ;;  %384 = vmatpush.msrb.mxu3 %v596_v12 }
  0x47   :  { %297 = vmatpush.msrb.mxu1 %v602_v13  ;;  %341 = vmatpush.msrb.mxu2 %v602_v13 }
  0x48   :  { %254 = vmatpush.msrb.mxu0 %v608_v14  ;;  %385 = vmatpush.msrb.mxu3 %v602_v13 }
  0x49   :  { %298 = vmatpush.msrb.mxu1 %v608_v14  ;;  %342 = vmatpush.msrb.mxu2 %v608_v14 }
  0x4a   :  { %255 = vmatpush.msrb.mxu0 %v614_v15  ;;  %386 = vmatpush.msrb.mxu3 %v608_v14 }
  0x4b   :  { %299 = vmatpush.msrb.mxu1 %v614_v15  ;;  %343 = vmatpush.msrb.mxu2 %v614_v15 }
  0x4c   :  { %387 = vmatpush.msrb.mxu3 %v614_v15 }
  0xa8   :  { %v82_v18 = vpop.f32.mrf.mxu0 }
  0xa9   :  { %v85_v19 = vadd.f32 %v82_v18, %v48_v17 }
  0xab   :  { %v86_v20 = vmax.f32 %v85_v19, 0.0 }
  0xad   :  { %88 = vst [vmem:[#allocation7] sm:$0xff] %v86_v20  ;;  %124 = vmatmul.f32.vlgmr.msra.gmra.mxu1 %v86_v20 }
 0x12a   :  { %v125_v22 = vpop.f32.mrf.mxu1 }
 0x12b   :  { %v128_v23 = vadd.f32 %v125_v22, %v91_v21 }
 0x12d   :  { %v129_v24 = vmax.f32 %v128_v23, 0.0 }
 0x12f   :  { %132 = vst [vmem:[#allocation7 + $0x8] sm:$0xff] %v129_v24  ;;  %168 = vmatmul.f32.vlgmr.msra.gmra.mxu2 %v129_v24 }
 0x1b2   :  { %v169_v26 = vpop.f32.mrf.mxu2 }
 0x1b3   :  { %v172_v27 = vadd.f32 %v169_v26, %v135_v25 }
 0x1b5   :  { %v173_v28 = vmax.f32 %v172_v27, 0.0 }
 0x1b7   :  { %176 = vst [vmem:[#allocation7 + $0x10] sm:$0xff] %v173_v28  ;;  %212 = vmatmul.f32.vlgmr.msra.gmra.mxu3 %v173_v28 }
 0x23a   :  { %v213_v30 = vpop.f32.mrf.mxu3 }
 0x23b   :  { %v216_v31 = vadd.f32 %v213_v30, %v179_v29 }
 0x23d   :  { %v217_v32 = vmax.f32 %v216_v31, 0.0 }
 0x23f   :  { %220 = vst [vmem:[#allocation7 + $0x18] sm:$0xff] %v217_v32  ;;  %256 = vmatmul.f32.vlgmr.msrb.gmra.mxu0 %v217_v32 }
 0x2bc   :  { %v257_v34 = vpop.f32.mrf.mxu0 }
 0x2bd   :  { %v260_v35 = vadd.f32 %v257_v34, %v223_v33 }
 0x2bf   :  { %v261_v36 = vmax.f32 %v260_v35, 0.0 }
 0x2c1   :  { %264 = vst [vmem:[#allocation7 + $0x20] sm:$0xff] %v261_v36  ;;  %300 = vmatmul.f32.vlgmr.msrb.gmra.mxu1 %v261_v36 }
 0x33e   :  { %v301_v38 = vpop.f32.mrf.mxu1 }
 0x33f   :  { %v304_v39 = vadd.f32 %v301_v38, %v267_v37 }
 0x341   :  { %v305_v40 = vmax.f32 %v304_v39, 0.0 }
 0x343   :  { %308 = vst [vmem:[#allocation7 + $0x28] sm:$0xff] %v305_v40  ;;  %344 = vmatmul.f32.vlgmr.msrb.gmra.mxu2 %v305_v40 }
 0x3c6   :  { %v345_v42 = vpop.f32.mrf.mxu2 }
 0x3c7   :  { %v348_v43 = vadd.f32 %v345_v42, %v311_v41 }
 0x3c9   :  { %v349_v44 = vmax.f32 %v348_v43, 0.0 }
 0x3cb   :  { %352 = vst [vmem:[#allocation7 + $0x30] sm:$0xff] %v349_v44  ;;  %388 = vmatmul.f32.vlgmr.msrb.gmra.mxu3 %v349_v44 }
 0x44e   :  { %v389_v46 = vpop.f32.mrf.mxu3 }
 0x44f   :  { %v392_v47 = vadd.f32 %v389_v46, %v355_v45 }
 0x451   :  { %v393_v48 = vmax.f32 %v392_v47, 0.0 }
 0x453   :  { %396 = vst [vmem:[#allocation7 + $0x38] sm:$0xff] %v393_v48 }
 0x454   :  { %409 = dma.vmem_to_hbm [thread:$0]  %s402_s1, 1024, %s404_s23, [#allocation6], %s501_s14, %s501_s14, %s502_s15  }
 0x455   :  { %498 = dma.done.wait [#allocation6], 1024  }
 0x456   :  { %499 = vsyncadd [#allocation6], 4294966272 }
 0x457   :  { %414 = vsyncpa [#allocation5], 1 }
 0x458   :  { %415 = vsyncpa [#allocation6], 1 }

</bundles_post_ra>
